<compile_context>
chip_gen: v5e
topology: v5e:2x2
jax: 0.10.0
libtpu: 0.0.40
codegen_flags: <defaults>
</compile_context>

<pallas_src>
import functools

import jax
import jax.numpy as jnp
from jax.experimental import pallas as pl
from jax.experimental.pallas import tpu as pltpu

BN_EPS = 1e-5


# ----------------------------------------------------------------------------
# Helpers
# ----------------------------------------------------------------------------
def _round_up(x, m):
    return ((x + m - 1) // m) * m


def _vmem_capacity_bytes():
    try:
        return int(pltpu.get_tpu_info().vmem_capacity_bytes)
    except Exception:
        # Conservative default = v7x physical VMEM per TensorCore.
        return 64 * 1024 * 1024


# ----------------------------------------------------------------------------
# Kernel 1: fully resident path (whole batch in VMEM, X read once)
# ----------------------------------------------------------------------------
def _resident_kernel(x_ref, w1_ref, bn_ref, wsh_ref, out_ref, *, total_n):
    # x_ref: (K, Np)   w1_ref: (32, K)   bn_ref: (32, 3)   wsh_ref: (1, 32)
    # out_ref: (1, Np)
    h = jnp.dot(w1_ref[...], x_ref[...], preferred_element_type=jnp.float32)

    inv_n = 1.0 / float(total_n)
    col = jax.lax.broadcasted_iota(jnp.int32, h.shape, 1)
    valid = col < total_n                              # mask padded columns

    # Exact centered (two-pass) BN statistics, as in the PyTorch reference.
    mean = jnp.sum(h, axis=1, keepdims=True) * inv_n   # padded h-columns are 0
    hc = jnp.where(valid, h - mean, 0.0)
    var = jnp.sum(hc * hc, axis=1, keepdims=True) * inv_n

    scale = bn_ref[:, 0:1] * jax.lax.rsqrt(var + BN_EPS)   # gamma / std
    shift = bn_ref[:, 1:2] - mean * scale                  # beta - mean*scale

    act = jnp.maximum(h * scale + shift, 0.0)               # (32, Np)
    logit = jnp.dot(wsh_ref[...], act,
                    preferred_element_type=jnp.float32) + bn_ref[0:1, 2:3]
    out_ref[...] = jax.nn.sigmoid(logit)                     # (1, Np) lane-dense


# ----------------------------------------------------------------------------
# Kernel 2: streaming two-phase path with VMEM H-cache
# ----------------------------------------------------------------------------
def _streaming_kernel(x_ref, w1_ref, bn_ref, wsh_ref, out_ref,
                      hcache_sc, sum_sc, sumsq_sc, shift0_sc, scale_sc, shiftbn_sc,
                      *, total_n, tile_n, cache_h):
    phase = pl.program_id(0)   # 0 = statistics pass, 1 = normalize + output
    tile = pl.program_id(1)
    inv_n = 1.0 / float(total_n)

    def first_layer():
        return jnp.dot(w1_ref[...], x_ref[...], preferred_element_type=jnp.float32)

    # ---- phase 0: stream X once, fill H-cache, accumulate BN statistics -----
    @pl.when(jnp.logical_and(phase == 0, tile == 0))
    def _init():
        sum_sc[...] = jnp.zeros_like(sum_sc)
        sumsq_sc[...] = jnp.zeros_like(sumsq_sc)

    @pl.when(phase == 0)
    def _stats():
        h = first_layer()                                     # (32, tile_n)
        if cache_h:
            start = pl.multiple_of(tile * tile_n, 128)
            hcache_sc[:, pl.ds(start, tile_n)] = h

        # Per-feature shift (~ batch mean, taken from the first tile) guards the
        # E[(h-s)^2] accumulation against catastrophic cancellation; the final
        # variance formula below is exact for ANY shift value.
        @pl.when(tile == 0)
        def _():
            shift0_sc[...] = jnp.sum(h, axis=1, keepdims=True) * (1.0 / float(tile_n))

        shift = shift0_sc[...]
        col = tile * tile_n + jax.lax.broadcasted_iota(jnp.int32, h.shape, 1)
        hc = jnp.where(col < total_n, h - shift, 0.0)          # mask padded cols
        sum_sc[...] += jnp.sum(h, axis=1, keepdims=True)       # padded cols are 0
        sumsq_sc[...] += jnp.sum(hc * hc, axis=1, keepdims=True)

    # ---- phase 1: fold stats once, then normalize + shared layer ------------
    @pl.when(jnp.logical_and(phase == 1, tile == 0))
    def _fold():
        mean = sum_sc[...] * inv_n
        d = mean - shift0_sc[...]
        var = sumsq_sc[...] * inv_n - d * d                    # exact for any shift
        scale = bn_ref[:, 0:1] * jax.lax.rsqrt(var + BN_EPS)
        scale_sc[...] = scale
        shiftbn_sc[...] = bn_ref[:, 1:2] - mean * scale

    @pl.when(phase == 1)
    def _apply():
        if cache_h:
            start = pl.multiple_of(tile * tile_n, 128)
            h = hcache_sc[:, pl.ds(start, tile_n)]             # no X re-read
        else:
            h = first_layer()                                  # fallback: recompute
        act = jnp.maximum(h * scale_sc[...] + shiftbn_sc[...], 0.0)
        logit = jnp.dot(wsh_ref[...], act,
                        preferred_element_type=jnp.float32) + bn_ref[0:1, 2:3]
        out_ref[...] = jax.nn.sigmoid(logit)                   # lane-dense store


# ----------------------------------------------------------------------------
# Wrapper
# ----------------------------------------------------------------------------
def dynamic_cws(reid_ft, fgbg_score, fused_params, *, x_dtype=jnp.float32,
                tile_n=None, force_streaming=False, use_h_cache=None):
    """Forward pass of DynamicCWS. Returns (N, 1) sigmoid weights (f32)."""
    n, reid_dim = reid_ft.shape
    k = reid_dim + 2

    # Feature-major input slab (layout plumbing, done once in XLA).
    x_t = jnp.concatenate([reid_ft, fgbg_score], axis=1).T.astype(x_dtype)  # (K, N)
    w1 = fused_params["w1"].astype(x_dtype)        # (32, K)  block-diagonal
    bn = fused_params["bn"]                        # (32, 3)  [gamma | beta | b_sh]
    w_sh = fused_params["w_sh"]                    # (1, 32)

    xb = jnp.dtype(x_dtype).itemsize
    vmem_cap = _vmem_capacity_bytes()
    budget = int(0.80 * vmem_cap)

    # ---------------- resident path (common case) ----------------------------
    n128 = _round_up(max(n, 1), 128)
    resident_bytes = (2 * k * xb + 2 * 4 + 4 * 32 * 4) * n128 + (1 << 20)
    if (not force_streaming) and resident_bytes <= budget:
        vmem_limit = int(min(0.95 * vmem_cap,
                             max(32 << 20, int(resident_bytes * 1.25))))
        x_p = jnp.pad(x_t, ((0, 0), (0, n128 - n)))
        kernel = functools.partial(_resident_kernel, total_n=n)
        out_t = pl.pallas_call(
            kernel,
            out_shape=jax.ShapeDtypeStruct((1, n128), jnp.float32),
            grid_spec=pltpu.PrefetchScalarGridSpec(
                num_scalar_prefetch=0,
                grid=(1,),
                in_specs=[
                    pl.BlockSpec((k, n128), lambda i: (0, 0)),
                    pl.BlockSpec((32, k), lambda i: (0, 0)),
                    pl.BlockSpec((32, 3), lambda i: (0, 0)),
                    pl.BlockSpec((1, 32), lambda i: (0, 0)),
                ],
                out_specs=pl.BlockSpec((1, n128), lambda i: (0, 0)),
            ),
            compiler_params=pltpu.CompilerParams(
                dimension_semantics=("arbitrary",),
                vmem_limit_bytes=vmem_limit,
            ),
        )(x_p, w1, bn, w_sh)
        return out_t[0, :n].reshape(n, 1)

    # ---------------- streaming two-phase path --------------------------------
    per_col = 2 * k * xb + 2 * 4 + 3 * 32 * 4     # x (dbl-buffered) + out + interm.
    if tile_n is None:
        tile_n = (budget // 2) // per_col
        tile_n = max(128, min(65536, (tile_n // 128) * 128))
    else:
        tile_n = max(128, (int(tile_n) // 128) * 128)
    n_pad = _round_up(max(n, 1), tile_n)
    num_tiles = n_pad // tile_n

    step_bytes = per_col * tile_n
    cache_bytes = 32 * n_pad * 4
    if use_h_cache is None:
        use_h_cache = (step_bytes + cache_bytes + (2 << 20)) <= budget

    hcache_shape = (32, n_pad) if use_h_cache else (32, 128)
    needed = step_bytes + 32 * hcache_shape[1] * 4 + (2 << 20)
    vmem_limit = int(min(0.95 * vmem_cap, max(32 << 20, int(needed * 1.25))))

    x_p = jnp.pad(x_t, ((0, 0), (0, n_pad - n)))
    kernel = functools.partial(_streaming_kernel, total_n=n, tile_n=tile_n,
                               cache_h=use_h_cache)

    if use_h_cache:
        # Phase 0 streams tile t; phase 1 pins X to the last tile -> no X DMAs.
        x_index_map = lambda p, t: (0, t * (1 - p) + (num_tiles - 1) * p)
    else:
        x_index_map = lambda p, t: (0, t)

    out_t = pl.pallas_call(
        kernel,
        out_shape=jax.ShapeDtypeStruct((1, n_pad), jnp.float32),
        grid_spec=pltpu.PrefetchScalarGridSpec(
            num_scalar_prefetch=0,
            grid=(2, num_tiles),                    # (phase, batch tile)
            in_specs=[
                pl.BlockSpec((k, tile_n), x_index_map),
                pl.BlockSpec((32, k), lambda p, t: (0, 0)),
                pl.BlockSpec((32, 3), lambda p, t: (0, 0)),
                pl.BlockSpec((1, 32), lambda p, t: (0, 0)),
            ],
            # Phase 0 never writes the output; pinning its index to block 0
            # avoids any garbage writeback DMAs (block 0 is overwritten at the
            # first phase-1 step before its index ever changes).
            out_specs=pl.BlockSpec((1, tile_n), lambda p, t: (0, t * p)),
            scratch_shapes=[
                pltpu.VMEM(hcache_shape, jnp.float32),   # H-cache (or dummy)
                pltpu.VMEM((32, 1), jnp.float32),        # sum(h)
                pltpu.VMEM((32, 1), jnp.float32),        # sum((h-shift)^2)
                pltpu.VMEM((32, 1), jnp.float32),        # shift (tile-0 mean)
                pltpu.VMEM((32, 1), jnp.float32),        # folded BN scale
                pltpu.VMEM((32, 1), jnp.float32),        # folded BN shift
            ],
        ),
        compiler_params=pltpu.CompilerParams(
            # Both axes carry state through VMEM scratch -> sequential.
            # TODO(synk): two-call split for v7x megacore (see header).
            dimension_semantics=("arbitrary", "arbitrary"),
            vmem_limit_bytes=vmem_limit,
        ),
    )(x_p, w1, bn, w_sh)
    return out_t[0, :n].reshape(n, 1)


# ----------------------------------------------------------------------------
# Parameters (synthetic, shapes match the PyTorch module) + pure-JAX reference
# ----------------------------------------------------------------------------
def init_params(key, reid_dim):
    ks = jax.random.split(key, 10)

    def linear_init(kw, kb, out_f, in_f):
        bound = 1.0 / (in_f ** 0.5)
        w = jax.random.uniform(kw, (out_f, in_f), jnp.float32, -bound, bound)
        b = jax.random.uniform(kb, (out_f,), jnp.float32, -bound, bound)
        return w, b

    w_reid, b_reid = linear_init(ks[0], ks[1], 16, reid_dim)
    w_fgbg, b_fgbg = linear_init(ks[2], ks[3], 16, 2)
    w_sh, b_sh = linear_init(ks[4], ks[5], 1, 32)

    g_reid = 1.0 + 0.1 * jax.random.normal(ks[6], (16,), jnp.float32)
    beta_reid = 0.1 * jax.random.normal(ks[7], (16,), jnp.float32)
    g_fgbg = 1.0 + 0.1 * jax.random.normal(ks[8], (16,), jnp.float32)
    beta_fgbg = 0.1 * jax.random.normal(ks[9], (16,), jnp.float32)

    raw = {
        "w_reid": w_reid, "b_reid": b_reid, "g_reid": g_reid, "beta_reid": beta_reid,
        "w_fgbg": w_fgbg, "b_fgbg": b_fgbg, "g_fgbg": g_fgbg, "beta_fgbg": beta_fgbg,
        "w_sh": w_sh, "b_sh": b_sh,
    }

    # Kernel layout: fused block-diagonal first-layer weight; pre-BN Linear
    # biases dropped (exactly cancelled by the BN mean subtraction); small
    # per-feature params packed into one (32, 3) slab.
    k = reid_dim + 2
    w1 = jnp.zeros((32, k), jnp.float32)
    w1 = w1.at[:16, :reid_dim].set(w_reid)
    w1 = w1.at[16:, reid_dim:].set(w_fgbg)
    bn = jnp.stack([
        jnp.concatenate([g_reid, g_fgbg]),
        jnp.concatenate([beta_reid, beta_fgbg]),
        jnp.full((32,), b_sh[0], jnp.float32),
    ], axis=1)                                      # (32, 3)
    fused = {"w1": w1, "bn": bn, "w_sh": w_sh}      # w_sh: (1, 32)
    return raw, fused


def _bn_train_ref(h, gamma, beta):
    mean = jnp.mean(h, axis=0, keepdims=True)
    var = jnp.mean((h - mean) ** 2, axis=0, keepdims=True)
    return (h - mean) * jax.lax.rsqrt(var + BN_EPS) * gamma + beta


def reference(reid_ft, fgbg_score, p):
    hp = jax.lax.Precision.HIGHEST
    ft = jnp.dot(reid_ft, p["w_reid"].T, precision=hp) + p["b_reid"]
    ft = jnp.maximum(_bn_train_ref(ft, p["g_reid"], p["beta_reid"]), 0.0)
    fg = jnp.dot(fgbg_score, p["w_fgbg"].T, precision=hp) + p["b_fgbg"]
    fg = jnp.maximum(_bn_train_ref(fg, p["g_fgbg"], p["beta_fgbg"]), 0.0)
    cat = jnp.concatenate([ft, fg], axis=1)
    logit = jnp.dot(cat, p["w_sh"].T, precision=hp) + p["b_sh"]
    return jax.nn.sigmoid(logit)


# ----------------------------------------------------------------------------
if __name__ == "__main__":
    key = jax.random.PRNGKey(0)
    k_in, k_fg, k_p = jax.random.split(key, 3)

    N, REID_DIM = 300, 32        # N not a multiple of 128 -> exercises padding
    reid_ft = jax.random.normal(k_in, (N, REID_DIM), jnp.float32)
    fgbg_score = jax.nn.softmax(jax.random.normal(k_fg, (N, 2), jnp.float32), axis=-1)
    raw_params, fused_params = init_params(k_p, REID_DIM)
    ref = reference(reid_ft, fgbg_score, raw_params)

    # 1) Resident single-pass path (the typical ROI-head batch-size regime).
    out = jax.block_until_ready(dynamic_cws(reid_ft, fgbg_score, fused_params))
    assert out.shape == (N, 1)
    err = float(jnp.max(jnp.abs(out - ref)))
    assert err < 1e-4, f"resident f32 max_err={err}"

    # 2) Streaming two-phase path with VMEM H-cache (X read from HBM once).
    out = jax.block_until_ready(
        dynamic_cws(reid_ft, fgbg_score, fused_params,
                    force_streaming=True, tile_n=128, use_h_cache=True))
    err = float(jnp.max(jnp.abs(out - ref)))
    assert err < 1e-4, f"streaming+cache max_err={err}"

    # 3) Streaming fallback without H-cache (H recomputed in phase 1).
    out = jax.block_until_ready(
        dynamic_cws(reid_ft, fgbg_score, fused_params,
                    force_streaming=True, tile_n=128, use_h_cache=False))
    err = float(jnp.max(jnp.abs(out - ref)))
    assert err < 1e-4, f"streaming no-cache max_err={err}"

    # 4) bf16 X/W1 streaming into the MXU (BN + sigmoid math stays f32).
    out = jax.block_until_ready(
        dynamic_cws(reid_ft, fgbg_score, fused_params, x_dtype=jnp.bfloat16))
    err = float(jnp.max(jnp.abs(out - ref)))
    assert err < 5e-2, f"resident bf16 max_err={err}"

    print("KERNEL_OK")
</pallas_src>

<mosaic_0001>
module attributes {stable_mosaic.version = 11 : i64} {
  func.func @_resident_kernel(%arg0: i32, %arg1: memref<34x384xf32, #tpu.memory_space<vmem>>, %arg2: memref<32x34xf32, #tpu.memory_space<vmem>>, %arg3: memref<32x3xf32, #tpu.memory_space<vmem>>, %arg4: memref<1x32xf32, #tpu.memory_space<vmem>>, %arg5: memref<1x384xf32, #tpu.memory_space<vmem>>) attributes {dimension_semantics = [#tpu.dimension_semantics<arbitrary>], iteration_bounds = array<i64: 1>, scalar_prefetch = 0 : i64, scratch_operands = 0 : i64, tpu.core_type = #tpu.core_type<tc>, window_params = [{pipeline_mode = #tpu.pipeline_mode<synchronous>, transform_indices = @transform_0, window_bounds = array<i64: 34, 384>}, {pipeline_mode = #tpu.pipeline_mode<synchronous>, transform_indices = @transform_1, window_bounds = array<i64: 32, 34>}, {pipeline_mode = #tpu.pipeline_mode<synchronous>, transform_indices = @transform_2, window_bounds = array<i64: 32, 3>}, {pipeline_mode = #tpu.pipeline_mode<synchronous>, transform_indices = @transform_3, window_bounds = array<i64: 1, 32>}, {pipeline_mode = #tpu.pipeline_mode<synchronous>, transform_indices = @transform_4, window_bounds = array<i64: 1, 384>}]} {
    %c0 = arith.constant 0 : index
    %c0_0 = arith.constant 0 : index
    %0 = vector.load %arg2[%c0, %c0_0] : memref<32x34xf32, #tpu.memory_space<vmem>>, vector<32x34xf32>
    %c0_1 = arith.constant 0 : index
    %c0_2 = arith.constant 0 : index
    %1 = vector.load %arg1[%c0_1, %c0_2] : memref<34x384xf32, #tpu.memory_space<vmem>>, vector<34x384xf32>
    %cst = arith.constant dense<0.000000e+00> : vector<32x384xf32>
    %2 = tpu.matmul %0, %1, %cst {dimension_numbers = #tpu.dot_dimension_numbers<[1], [0], [0], [1], [0, 0, 1, 1], [], []>} : vector<32x34xf32>, vector<34x384xf32>, vector<32x384xf32> -> vector<32x384xf32>
    %3 = tpu.iota {dimensions = array<i32: 1>} : vector<32x384xi32>
    %c300_i32 = arith.constant 300 : i32
    %4 = vector.broadcast %c300_i32 : i32 to vector<32x384xi32>
    %5 = arith.cmpi slt, %3, %4 : vector<32x384xi32>
    %cst_3 = arith.constant dense<0.000000e+00> : vector<32xf32>
    %6 = vector.multi_reduction <add>, %2, %cst_3 [1] : vector<32x384xf32> to vector<32xf32>
    %7 = vector.shape_cast %6 : vector<32xf32> to vector<32x1xf32>
    %cst_4 = arith.constant 0.00333333341 : f32
    %8 = vector.broadcast %cst_4 : f32 to vector<32x1xf32>
    %9 = arith.mulf %7, %8 : vector<32x1xf32>
    %10 = vector.broadcast %9 : vector<32x1xf32> to vector<32x384xf32>
    %11 = arith.subf %2, %10 : vector<32x384xf32>
    %cst_5 = arith.constant 0.000000e+00 : f32
    %12 = vector.broadcast %cst_5 : f32 to vector<32x384xf32>
    %13 = arith.select %5, %11, %12 : vector<32x384xi1>, vector<32x384xf32>
    %14 = arith.mulf %13, %13 : vector<32x384xf32>
    %cst_6 = arith.constant dense<0.000000e+00> : vector<32xf32>
    %15 = vector.multi_reduction <add>, %14, %cst_6 [1] : vector<32x384xf32> to vector<32xf32>
    %16 = vector.shape_cast %15 : vector<32xf32> to vector<32x1xf32>
    %cst_7 = arith.constant 0.00333333341 : f32
    %17 = vector.broadcast %cst_7 : f32 to vector<32x1xf32>
    %18 = arith.mulf %16, %17 : vector<32x1xf32>
    %c0_8 = arith.constant 0 : index
    %c0_9 = arith.constant 0 : index
    %19 = vector.load %arg3[%c0_8, %c0_9] : memref<32x3xf32, #tpu.memory_space<vmem>>, vector<32x1xf32>
    %cst_10 = arith.constant 9.99999974E-6 : f32
    %20 = vector.broadcast %cst_10 : f32 to vector<32x1xf32>
    %21 = arith.addf %18, %20 : vector<32x1xf32>
    %22 = math.rsqrt %21 : vector<32x1xf32>
    %23 = arith.mulf %19, %22 : vector<32x1xf32>
    %c0_11 = arith.constant 0 : index
    %c1 = arith.constant 1 : index
    %24 = vector.load %arg3[%c0_11, %c1] : memref<32x3xf32, #tpu.memory_space<vmem>>, vector<32x1xf32>
    %25 = arith.mulf %9, %23 : vector<32x1xf32>
    %26 = arith.subf %24, %25 : vector<32x1xf32>
    %27 = vector.broadcast %23 : vector<32x1xf32> to vector<32x384xf32>
    %28 = arith.mulf %2, %27 : vector<32x384xf32>
    %29 = vector.broadcast %26 : vector<32x1xf32> to vector<32x384xf32>
    %30 = arith.addf %28, %29 : vector<32x384xf32>
    %cst_12 = arith.constant 0.000000e+00 : f32
    %31 = vector.broadcast %cst_12 : f32 to vector<32x384xf32>
    %32 = arith.maximumf %30, %31 : vector<32x384xf32>
    %c0_13 = arith.constant 0 : index
    %c0_14 = arith.constant 0 : index
    %33 = vector.load %arg4[%c0_13, %c0_14] : memref<1x32xf32, #tpu.memory_space<vmem>>, vector<1x32xf32>
    %cst_15 = arith.constant dense<0.000000e+00> : vector<1x384xf32>
    %34 = tpu.matmul %33, %32, %cst_15 {dimension_numbers = #tpu.dot_dimension_numbers<[1], [0], [0], [1], [0, 0, 1, 1], [], []>} : vector<1x32xf32>, vector<32x384xf32>, vector<1x384xf32> -> vector<1x384xf32>
    %c0_16 = arith.constant 0 : index
    %c2 = arith.constant 2 : index
    %35 = vector.load %arg3[%c0_16, %c2] : memref<32x3xf32, #tpu.memory_space<vmem>>, vector<1x1xf32>
    %36 = vector.broadcast %35 : vector<1x1xf32> to vector<1x384xf32>
    %37 = arith.addf %34, %36 : vector<1x384xf32>
    %38 = arith.negf %37 : vector<1x384xf32>
    %39 = math.exp %38 : vector<1x384xf32>
    %cst_17 = arith.constant 1.000000e+00 : f32
    %40 = vector.broadcast %cst_17 : f32 to vector<1x384xf32>
    %41 = arith.addf %40, %39 : vector<1x384xf32>
    %42 = arith.divf %40, %41 : vector<1x384xf32>
    %c0_18 = arith.constant 0 : index
    %c0_19 = arith.constant 0 : index
    %43 = vector.load %arg5[%c0_18, %c0_19] : memref<1x384xf32, #tpu.memory_space<vmem>>, vector<1x384xf32>
    tpu.vector_store %arg5[%c0_18, %c0_19], %42 {strides = array<i32>} : memref<1x384xf32, #tpu.memory_space<vmem>>, vector<1x384xf32>,
    return
  }
  func.func @transform_0(%arg0: i32) -> (i32, i32) {
    %c0_i32 = arith.constant 0 : i32
    %c0_i32_0 = arith.constant 0 : i32
    %c0_i32_1 = arith.constant 0 : i32
    return %c0_i32, %c0_i32_0 : i32, i32
  }
  func.func @transform_1(%arg0: i32) -> (i32, i32) {
    %c0_i32 = arith.constant 0 : i32
    %c0_i32_0 = arith.constant 0 : i32
    %c0_i32_1 = arith.constant 0 : i32
    return %c0_i32, %c0_i32_0 : i32, i32
  }
  func.func @transform_2(%arg0: i32) -> (i32, i32) {
    %c0_i32 = arith.constant 0 : i32
    %c0_i32_0 = arith.constant 0 : i32
    %c0_i32_1 = arith.constant 0 : i32
    return %c0_i32, %c0_i32_0 : i32, i32
  }
  func.func @transform_3(%arg0: i32) -> (i32, i32) {
    %c0_i32 = arith.constant 0 : i32
    %c0_i32_0 = arith.constant 0 : i32
    %c0_i32_1 = arith.constant 0 : i32
    return %c0_i32, %c0_i32_0 : i32, i32
  }
  func.func @transform_4(%arg0: i32) -> (i32, i32) {
    %c0_i32 = arith.constant 0 : i32
    %c0_i32_0 = arith.constant 0 : i32
    %c0_i32_1 = arith.constant 0 : i32
    return %c0_i32, %c0_i32_0 : i32, i32
  }
}

</mosaic_0001>

<bundles_post_ra>
// kernel: tpu_custom_call.1
= control target key start
LH: loop header
LB: loop body
LE: loop exit
PB: predicated region body
PF: predicated region fallthrough
CT: control target
= control target key end

     0   :  { %9 = vsyncpa [#allocation3], 0  ;;  %s855_s0 = inlined_call_operand.hbm [shape: f32[34,384], index: 0, kind: input, shape index: {}]   ;;  %s856_s1 = inlined_call_operand.vmem [shape: f32[32,34], index: 1, kind: input, shape index: {}]   ;;  %s857_s2 = inlined_call_operand.vmem [shape: f32[32,3], index: 2, kind: input, shape index: {}]   ;;  %s858_s3 = inlined_call_operand.vmem [shape: f32[1,32], index: 3, kind: input, shape index: {}]   ;;  %s859_s4 = inlined_call_operand.hbm [shape: f32[1,384], index: 4, kind: output, shape index: {}]  }
   0x1   :  { %10 = vsyncpa [#allocation4], 0  ;;  %s15_s17 = sshll.u32 %s855_s0, 4  ;;  %s663_s18 = smov [#allocation2]   ;;  %s16_s17 = int_to_ptr.hbm [resolvable:$true] %s15_s17 }
   0x2   :  { %s17_s19 = sshll.u32 %s663_s18, 4  ;;  %s664_s20 = smov 384   ;;  %s18_s19 = int_to_ptr.vmem [resolvable:$true] %s17_s19 }
   0x3   :  { %s665_s21 = smov 24  }
   0x4   :  { %23 = dma.hbm_to_vmem [thread:$0]  %s16_s17, 1920, %s18_s19, [#allocation3], %s664_s20, %s664_s20, %s665_s21  }
   0x5   :  { %659 = dma.done.wait [#allocation3], 1920  }
   0x6   :  { %660 = vsyncadd [#allocation3], 4294965376  ;;  %vm66_vm0 = vcmask 1041408   ;;  %v52_v0 = vld [vmem:[#allocation2 + $0x70] sm:$0x3]  ;;  %v49_v1 = vld [vmem:[#allocation2 + $0x58] sm:$0xff]  ;;  %v163_v39 = vlaneseq }
   0x7   :  { %v50_v2 = vld [vmem:[#allocation2 + $0x60] sm:$0x3]  ;;  %567 = vmatpush.msk.msra.mxu2 %vm66_vm0, %v52_v0  ;;  %v51_v3 = vld [vmem:[#allocation2 + $0x68] sm:$0x3]  ;;  %v48_v6 = vld [vmem:[#allocation2 + $0x50] sm:$0xff]  ;;  %vm53_vm1 = vcmask 277504  }
   0x8   :  { %557 = vmatpush.msk.msra.mxu0 %vm66_vm0, %v50_v2  ;;  %v47_v4 = vld [vmem:[#allocation2 + $0x48] sm:$0xff]  ;;  %562 = vmatpush.msk.msra.mxu1 %vm66_vm0, %v51_v3  ;;  %v46_v5 = vld [vmem:[#allocation2 + $0x40] sm:$0xff]  ;;  %v44_v7 = vld [vmem:[#allocation2 + $0x30] sm:$0xff]  ;;  %v164_v40 = vand.u32 127, %v163_v39  ;;  %s667_s30 = smov 1   ;;  %vm405_vm15 = vcmask 261120  }
   0x9   :  { %146 = vmatpush.msra.mxu2 %v49_v1  ;;  %v45_v8 = vld [vmem:[#allocation2 + $0x38] sm:$0xff]  ;;  %v43_v9 = vld [vmem:[#allocation2 + $0x28] sm:$0xff]  ;;  %v42_v11 = vld [vmem:[#allocation2 + $0x20] sm:$0xff]  ;;  %s547_s17 = sshll.u32 %s859_s4, 4  ;;  %s548_s17 = int_to_ptr.hbm [resolvable:$true] %s547_s17 }
   0xa   :  { %88 = vmatpush.msra.mxu0 %v47_v4  ;;  %117 = vmatpush.msra.mxu1 %v48_v6  ;;  %v41_v10 = vld [vmem:[#allocation2 + $0x18] sm:$0xff]  ;;  %v40_v12 = vld [vmem:[#allocation2 + $0x10] sm:$0xff]  ;;  %v38_v13 = vld [vmem:[#allocation2] sm:$0xff]  ;;  %v166_v41 = vadd.s32 256, %v164_v40 }
   0xb   :  { %147 = vmatpush.msra.mxu2 %v46_v5  ;;  %v34_v14 = vld [vmem:[%s856_s1] sm:$0xff]  ;;  %v39_v15 = vld [vmem:[#allocation2 + $0x8] sm:$0xff]  ;;  %v36_v17 = vld [vmem:[%s856_s1 + $0x10] sm:$0xff] }
   0xc   :  { %89 = vmatpush.msra.mxu0 %v44_v7  ;;  %118 = vmatpush.msra.mxu1 %v45_v8  ;;  %v35_v16 = vld [vmem:[%s856_s1 + $0x8] sm:$0xff]  ;;  %v37_v18 = vld [vmem:[%s856_s1 + $0x18] sm:$0xff]  ;;  %vm169_vm2 = vcmp.lt.s32.totalorder %v166_v41, 300 }
   0xd   :  { %148 = vmatpush.msra.mxu2 %v43_v9 }
   0xe   :  { %90 = vmatpush.msra.mxu0 %v41_v10  ;;  %119 = vmatpush.msra.mxu1 %v42_v11 }
   0xf   :  { %149 = vmatpush.msra.mxu2 %v40_v12 }
  0x10   :  { %91 = vmatpush.msra.mxu0 %v38_v13  ;;  %568 = vmatmul.msk.f32.vlgmr.msra.gmra.mxu2 %vm53_vm1, %v34_v14 }
  0x11   :  { %120 = vmatpush.msra.mxu1 %v39_v15  ;;  %558 = vmatmul.msk.f32.vlgmr.msra.gmra.mxu0 %vm53_vm1, %v34_v14 }
  0x12   :  { %563 = vmatmul.msk.f32.vlgmr.msra.gmra.mxu1 %vm53_vm1, %v34_v14 }
  0x18   :  { %569 = vmatmul.msk.f32.gmra.mxu2 %vm53_vm1, %v35_v16 }
  0x19   :  { %559 = vmatmul.msk.f32.gmra.mxu0 %vm53_vm1, %v35_v16 }
  0x1a   :  { %564 = vmatmul.msk.f32.gmra.mxu1 %vm53_vm1, %v35_v16 }
  0x20   :  { %570 = vmatmul.msk.f32.gmra.mxu2 %vm53_vm1, %v36_v17 }
  0x21   :  { %560 = vmatmul.msk.f32.gmra.mxu0 %vm53_vm1, %v36_v17 }
  0x22   :  { %565 = vmatmul.msk.f32.gmra.mxu1 %vm53_vm1, %v36_v17 }
  0x28   :  { %571 = vmatmul.msk.f32.gmra.mxu2 %vm53_vm1, %v37_v18 }
  0x29   :  { %561 = vmatmul.msk.f32.gmra.mxu0 %vm53_vm1, %v37_v18 }
  0x2a   :  { %566 = vmatmul.msk.f32.gmra.mxu1 %vm53_vm1, %v37_v18 }
  0x8e   :  { %v726_v19 = vpop.f32.mrf.mxu0 }
  0x8f   :  { %v728_v20 = vpop.f32.mrf.mxu1 }
  0x90   :  { %v170_v29 = vadd.f32 %v728_v20, %v726_v19 }
  0x93   :  { %v730_v21 = vpop.f32.mrf.mxu2 }
  0x94   :  { %v171_v31 = vadd.f32 %v170_v29, %v730_v21 }
  0x96   :  { %v732_v22 = vpop.f32.mrf.mxu0 }
  0x97   :  { %v734_v23 = vpop.f32.mrf.mxu1 }
  0x98   :  { %v174_v24 = vadd.f32 %v734_v23, %v732_v22 }
  0x9b   :  { %v738_v25 = vpop.f32.mrf.mxu2 }
  0x9c   :  { %v175_v26 = vadd.f32 %v174_v24, %v738_v25 }
  0x9e   :  { %176 = vadd.xlane.f32.xlu1 %v175_v26  ;;  %v741_v27 = vpop.f32.mrf.mxu0 }
  0x9f   :  { %v743_v28 = vpop.f32.mrf.mxu1 }
  0xa0   :  { %v178_v37 = vadd.f32 %v743_v28, %v741_v27 }
  0xa3   :  { %v747_v30 = vpop.f32.mrf.mxu2 }
  0xa4   :  { %v179_v38 = vadd.f32 %v178_v37, %v747_v30 }
  0xa6   :  { %172 = vadd.xlane.f32.xlu1 %v171_v31  ;;  %v750_v32 = vpop.f32.mrf.mxu0 }
  0xa7   :  { %v752_v33 = vpop.f32.mrf.mxu1 }
  0xa8   :  { %v182_v34 = vadd.f32 %v752_v33, %v750_v32 }
  0xab   :  { %v756_v35 = vpop.f32.mrf.mxu2 }
  0xac   :  { %v183_v36 = vadd.f32 %v182_v34, %v756_v35 }
  0xae   :  { %184 = vadd.xlane.f32.xlu0 %v183_v36 }
  0xb6   :  { %180 = vadd.xlane.f32.xlu0 %v179_v38 }
 0x111   :  { %v177_v42 = vpop.xlane.xlu1 %176 }
 0x112   :  { %v763_v43 = vmul.f32 0.0033333334, %v177_v42 }
 0x114   :  { %v193_v44 = vsub.f32 %v732_v22, %v763_v43  ;;  %v194_v45 = vsub.f32 %v734_v23, %v763_v43  ;;  %v195_v46 = vsub.f32 %v738_v25, %v763_v43 }
 0x116   :  { %v207_v47 = vsel %vm169_vm2, %v195_v46, 0.0  ;;  %v217_v48 = vmul.f32 %v193_v44, %v193_v44  ;;  %v218_v49 = vmul.f32 %v194_v45, %v194_v45 }
 0x117   :  { %v219_v50 = vmul.f32 %v207_v47, %v207_v47 }
 0x118   :  { %v230_v51 = vadd.f32 %v218_v49, %v217_v48 }
 0x119   :  { %v173_v52 = vpop.xlane.xlu1 %172 }
 0x11a   :  { %v772_v53 = vmul.f32 0.0033333334, %v173_v52  ;;  %v231_v54 = vadd.f32 %v230_v51, %v219_v50  ;;  %v802_v52 = vld [vmem:[%s857_s2 + $0x8] sm:$0xff] }
 0x11c   :  { %232 = vadd.xlane.f32.xlu0 %v231_v54  ;;  %v190_v55 = vsub.f32 %v726_v19, %v772_v53  ;;  %v191_v56 = vsub.f32 %v728_v20, %v772_v53  ;;  %v192_v57 = vsub.f32 %v730_v21, %v772_v53  ;;  %v666_v54 = vmov 0  }
 0x11d   :  { %587 = vset.pattern.permute.xlu2 %v666_v54  ;;  %586 = vset.pattern.permute.xlu0 %v666_v54 }
 0x11e   :  { %v204_v58 = vsel %vm169_vm2, %v192_v57, 0.0  ;;  %v214_v59 = vmul.f32 %v190_v55, %v190_v55  ;;  %v215_v60 = vmul.f32 %v191_v56, %v191_v56 }
 0x11f   :  { %v216_v61 = vmul.f32 %v204_v58, %v204_v58 }
 0x120   :  { %v226_v62 = vadd.f32 %v215_v60, %v214_v59 }
 0x121   :  { %v185_v63 = vpop.xlane.xlu0 %184 }
 0x122   :  { %v781_v0 = vmul.f32 0.0033333334, %v185_v63  ;;  %v227_v1 = vadd.f32 %v226_v62, %v216_v61 }
 0x124   :  { %228 = vadd.xlane.f32.xlu1 %v227_v1  ;;  %v199_v2 = vsub.f32 %v750_v32, %v781_v0  ;;  %v200_v3 = vsub.f32 %v752_v33, %v781_v0  ;;  %v201_v4 = vsub.f32 %v756_v35, %v781_v0 }
 0x126   :  { %v213_v5 = vsel %vm169_vm2, %v201_v4, 0.0  ;;  %v223_v6 = vmul.f32 %v199_v2, %v199_v2  ;;  %v224_v7 = vmul.f32 %v200_v3, %v200_v3 }
 0x127   :  { %v225_v8 = vmul.f32 %v213_v5, %v213_v5 }
 0x128   :  { %v238_v9 = vadd.f32 %v224_v7, %v223_v6 }
 0x129   :  { %v181_v10 = vpop.xlane.xlu0 %180 }
 0x12a   :  { %v790_v11 = vmul.f32 0.0033333334, %v181_v10  ;;  %v239_v12 = vadd.f32 %v238_v9, %v225_v8 }
 0x12c   :  { %240 = vadd.xlane.f32.xlu2 %v239_v12  ;;  %v196_v13 = vsub.f32 %v741_v27, %v790_v11  ;;  %v197_v14 = vsub.f32 %v743_v28, %v790_v11  ;;  %v198_v15 = vsub.f32 %v747_v30, %v790_v11 }
 0x12e   :  { %v210_v16 = vsel %vm169_vm2, %v198_v15, 0.0  ;;  %v220_v17 = vmul.f32 %v196_v13, %v196_v13  ;;  %v221_v18 = vmul.f32 %v197_v14, %v197_v14 }
 0x12f   :  { %v222_v24 = vmul.f32 %v210_v16, %v210_v16 }
 0x130   :  { %v234_v26 = vadd.f32 %v221_v18, %v220_v17  ;;  %v246_v18 = vld [vmem:[%s857_s2] sm:$0xff] }
 0x132   :  { %v235_v29 = vadd.f32 %v234_v26, %v222_v24 }
 0x134   :  { %236 = vadd.xlane.f32.xlu2 %v235_v29  ;;  %v248_v29 = vld [vmem:[%s857_s2 + $0x10] sm:$0xff] }
 0x18f   :  { %v233_v31 = vpop.xlane.xlu0 %232 }
 0x190   :  { %v243_v34 = vmul.f32 0.0033333334, %v233_v31 }
 0x192   :  { %v251_v36 = vadd.f32 1e-05, %v243_v34 }
 0x194   :  { %591 = vrsqrt.f32 %v251_v36  ;;  %vm270_vm4 = vweird.f32 %v251_v36 }
 0x197   :  { %v229_v37 = vpop.xlane.xlu1 %228 }
 0x198   :  { %v242_v38 = vmul.f32 0.0033333334, %v229_v37 }
 0x19a   :  { %v592_v40 = vpop.eup %591  ;;  %v250_v42 = vadd.f32 1e-05, %v242_v38  ;;  %v668_v38 = vmov 1  }
 0x19b   :  { %v265_v44 = vmul.f32 %v592_v40, %v251_v36  ;;  %vm271_vm3 = vweird.f32 %v592_v40  ;;  %588 = vset.pattern.permute.xlu1 %v668_v38 }
 0x19c   :  { %593 = vrsqrt.f32 %v250_v42  ;;  %vm272_vm5 = vmor %vm270_vm4, %vm271_vm3  ;;  %vm260_vm10 = vweird.f32 %v250_v42 }
 0x19d   :  { %v266_v45 = vmul.f32 %v592_v40, %v265_v44 }
 0x19f   :  { %v267_v46 = vmul.f32 0.5, %v266_v45  ;;  %v241_v41 = vpop.xlane.xlu2 %240 }
 0x1a0   :  { %v245_v47 = vmul.f32 0.0033333334, %v241_v41 }
 0x1a1   :  { %v268_v48 = vsub.f32 1.5, %v267_v46 }
 0x1a2   :  { %v594_v49 = vpop.eup %593  ;;  %v253_v50 = vadd.f32 1e-05, %v245_v47 }
 0x1a3   :  { %v269_v51 = vmul.f32 %v592_v40, %v268_v48  ;;  %v255_v55 = vmul.f32 %v594_v49, %v250_v42  ;;  %vm261_vm9 = vweird.f32 %v594_v49 }
 0x1a4   :  { %595 = vrsqrt.f32 %v253_v50  ;;  %vm290_vm7 = vweird.f32 %v253_v50  ;;  %vm262_vm11 = vmor %vm260_vm10, %vm261_vm9 }
 0x1a5   :  { %v273_v56 = vsel %vm272_vm5, %v592_v40, %v269_v51  ;;  %v256_v61 = vmul.f32 %v594_v49, %v255_v55  ;;  %v669_v51 = vmov 2   ;;  %v399_v55 = vld [vmem:[%s857_s2] sm:$0x1] }
 0x1a6   :  { %v295_v57 = vmul.f32 %v273_v56, %v802_v52 }
 0x1a7   :  { %v237_v58 = vpop.xlane.xlu2 %236  ;;  %v257_v2 = vmul.f32 0.5, %v256_v61 }
 0x1a8   :  { %v244_v59 = vmul.f32 0.0033333334, %v237_v58  ;;  %v299_v60 = vmul.f32 %v295_v57, %v763_v43  ;;  %v249_v43 = vld [vmem:[%s857_s2 + $0x18] sm:$0xff] }
 0x1a9   :  { %v258_v5 = vsub.f32 1.5, %v257_v2 }
 0x1aa   :  { %v596_v62 = vpop.eup %595  ;;  %v252_v63 = vadd.f32 1e-05, %v244_v59  ;;  %308 = vrot.lane.b32.xlu1 %v299_v60, %s667_s30 }
 0x1ab   :  { %v285_v1 = vmul.f32 %v596_v62, %v253_v50  ;;  %vm291_vm6 = vweird.f32 %v596_v62  ;;  %v259_v10 = vmul.f32 %v594_v49, %v258_v5 }
 0x1ac   :  { %597 = vrsqrt.f32 %v252_v63  ;;  %vm292_vm8 = vmor %vm290_vm7, %vm291_vm6  ;;  %vm280_vm13 = vweird.f32 %v252_v63 }
 0x1ad   :  { %v286_v3 = vmul.f32 %v596_v62, %v285_v1  ;;  %v263_v24 = vsel %vm262_vm11, %v594_v49, %v259_v10 }
 0x1ae   :  { %v294_v31 = vmul.f32 %v263_v24, %v246_v18 }
 0x1af   :  { %v287_v4 = vmul.f32 0.5, %v286_v3 }
 0x1b1   :  { %v288_v6 = vsub.f32 1.5, %v287_v4 }
 0x1b2   :  { %v598_v7 = vpop.eup %597 }
 0x1b3   :  { %v289_v8 = vmul.f32 %v596_v62, %v288_v6  ;;  %v275_v9 = vmul.f32 %v598_v7, %v252_v63  ;;  %vm281_vm12 = vweird.f32 %v598_v7 }
 0x1b4   :  { %vm282_vm14 = vmor %vm280_vm13, %vm281_vm12  ;;  %vm531_vm12 = vcmask 1040384  }
 0x1b5   :  { %v276_v12 = vmul.f32 %v598_v7, %v275_v9  ;;  %v293_v13 = vsel %vm292_vm8, %v596_v62, %v289_v8  ;;  %v398_v8 = vld [vmem:[%s858_s3] sm:$0x1]  ;;  %s670_s3 = smov [#allocation5]  }
 0x1b6   :  { %v297_v14 = vmul.f32 %v293_v13, %v249_v43  ;;  %s545_s14 = sshll.u32 %s670_s3, 4  ;;  %s546_s14 = int_to_ptr.vmem [resolvable:$true] %s545_s14 }
 0x1b7   :  { %v277_v15 = vmul.f32 0.5, %v276_v12 }
 0x1b8   :  { %v301_v16 = vmul.f32 %v297_v14, %v781_v0  ;;  %v298_v0 = vmul.f32 %v294_v31, %v772_v53 }
 0x1b9   :  { %v278_v17 = vsub.f32 1.5, %v277_v15 }
 0x1ba   :  { %312 = vrot.lane.b32.xlu2 %v301_v16, %s667_s30 }
 0x1bb   :  { %v279_v26 = vmul.f32 %v598_v7, %v278_v17 }
 0x1bd   :  { %v283_v34 = vsel %vm282_vm14, %v598_v7, %v279_v26  ;;  %vm537_vm14 = vcmp.lt.s32.totalorder %v163_v39, 384 }
 0x1be   :  { %v296_v36 = vmul.f32 %v283_v34, %v248_v29 }
 0x1c0   :  { %v300_v37 = vmul.f32 %v296_v36, %v790_v11 }
 0x1c2   :  { %306 = vrot.lane.b32.xlu2 %v298_v0, %s667_s30  ;;  %310 = vrot.lane.b32.xlu0 %v300_v37, %s667_s30 }
 0x1ca   :  { %334 = vperm.xlu2 %587, %v296_v36   ;;  %339 = vperm.xlu0 %586, %v297_v14  }
 0x1d2   :  { %324 = vperm.xlu0 %586, %v294_v31   ;;  %329 = vperm.xlu2 %587, %v295_v57  }
 0x1da   :  { %589 = vset.pattern.permute.xlu2 %v668_v38  ;;  %590 = vset.pattern.permute.xlu0 %v669_v51 }
 0x1db   :  { %402 = vperm.xlu0 %590, %v399_v55  }
 0x214   :  { %v313_v53 = vpop.permute.xlu2 %312 }
 0x215   :  { %v321_v11 = vsub.f32 %v249_v43, %v313_v53 }
 0x21c   :  { %v309_v40 = vpop.permute.xlu1 %308  ;;  %v307_v46 = vpop.permute.xlu2 %306 }
 0x21d   :  { %v319_v42 = vsub.f32 %v802_v52, %v309_v40  ;;  %v318_v41 = vsub.f32 %v246_v18, %v307_v46 }
 0x21f   :  { %361 = vperm.xlu2 %589, %v319_v42  }
 0x224   :  { %v335_v47 = vpop.permute.xlu2 %334 }
 0x225   :  { %v348_v54 = vmul.f32 %v335_v47, %v741_v27  ;;  %v349_v4 = vmul.f32 %v335_v47, %v743_v28 }
 0x22c   :  { %v330_v48 = vpop.permute.xlu2 %329 }
 0x22d   :  { %v345_v58 = vmul.f32 %v330_v48, %v732_v22  ;;  %v346_v22 = vmul.f32 %v330_v48, %v734_v23  ;;  %v350_v23 = vmul.f32 %v335_v47, %v747_v30  ;;  %v347_v15 = vmul.f32 %v330_v48, %v738_v25 }
 0x234   :  { %v311_v44 = vpop.permute.xlu0 %310 }
 0x235   :  { %v320_v45 = vsub.f32 %v248_v29, %v311_v44 }
 0x237   :  { %366 = vperm.xlu1 %588, %v320_v45  }
 0x23c   :  { %v340_v50 = vpop.permute.xlu0 %339 }
 0x23d   :  { %v351_v52 = vmul.f32 %v340_v50, %v750_v32  ;;  %v352_v27 = vmul.f32 %v340_v50, %v752_v33  ;;  %v353_v10 = vmul.f32 %v340_v50, %v756_v35 }
 0x23f   :  { %371 = vperm.xlu1 %588, %v321_v11  }
 0x244   :  { %v325_v63 = vpop.permute.xlu0 %324 }
 0x245   :  { %v342_v32 = vmul.f32 %v325_v63, %v726_v19  ;;  %v343_v33 = vmul.f32 %v325_v63, %v728_v20  ;;  %v344_v17 = vmul.f32 %v325_v63, %v730_v21 }
 0x247   :  { %356 = vperm.xlu1 %588, %v318_v41  }
 0x24d   :  { %v403_v25 = vpop.permute.xlu0 %402 }
 0x279   :  { %v362_v56 = vpop.permute.xlu2 %361 }
 0x27a   :  { %v377_v61 = vadd.f32 %v362_v56, %v345_v58  ;;  %v378_v19 = vadd.f32 %v362_v56, %v346_v22  ;;  %v379_v18 = vadd.f32 %v362_v56, %v347_v15 }
 0x27c   :  { %v389_v2 = vmax.f32 %v377_v61, 0.0  ;;  %v390_v14 = vmax.f32 %v378_v19, 0.0  ;;  %v391_v29 = vmax.f32 %v379_v18, 0.0 }
 0x2a9   :  { %v367_v49 = vpop.permute.xlu1 %366 }
 0x2aa   :  { %v380_v60 = vadd.f32 %v367_v49, %v348_v54  ;;  %v381_v9 = vadd.f32 %v367_v49, %v349_v4  ;;  %v382_v16 = vadd.f32 %v367_v49, %v350_v23 }
 0x2ac   :  { %v392_v1 = vmax.f32 %v380_v60, 0.0  ;;  %v393_v12 = vmax.f32 %v381_v9, 0.0  ;;  %v394_v26 = vmax.f32 %v382_v16, 0.0 }
 0x2b1   :  { %v372_v57 = vpop.permute.xlu1 %371 }
 0x2b2   :  { %v383_v59 = vadd.f32 %v372_v57, %v351_v52  ;;  %v384_v6 = vadd.f32 %v372_v57, %v352_v27  ;;  %v385_v13 = vadd.f32 %v372_v57, %v353_v10 }
 0x2b4   :  { %v395_v62 = vmax.f32 %v383_v59, 0.0  ;;  %v396_v43 = vmax.f32 %v384_v6, 0.0  ;;  %v397_v24 = vmax.f32 %v385_v13, 0.0 }
 0x2b6   :  { %421 = vmatpush.msra.mxu3 %v395_v62 }
 0x2b8   :  { %422 = vmatpush.msra.mxu3 %v392_v1 }
 0x2b9   :  { %v357_v3 = vpop.permute.xlu1 %356 }
 0x2ba   :  { %v374_v5 = vadd.f32 %v357_v3, %v342_v32  ;;  %423 = vmatpush.msra.mxu3 %v389_v2  ;;  %v375_v28 = vadd.f32 %v357_v3, %v343_v33  ;;  %v376_v35 = vadd.f32 %v357_v3, %v344_v17 }
 0x2bc   :  { %v386_v7 = vmax.f32 %v374_v5, 0.0  ;;  %v387_v20 = vmax.f32 %v375_v28, 0.0  ;;  %v388_v30 = vmax.f32 %v376_v35, 0.0 }
 0x2be   :  { %424 = vmatpush.msra.mxu3 %v386_v7 }
 0x2bf   :  { %572 = vmatmul.msk.f32.vlgmr.msra.gmra.mxu3 %vm405_vm15, %v398_v8 }
 0x2c0   :  { %441 = vmatpush.msrb.mxu3 %v396_v43 }
 0x2c2   :  { %442 = vmatpush.msrb.mxu3 %v393_v12 }
 0x2c4   :  { %443 = vmatpush.msrb.mxu3 %v390_v14 }
 0x2c6   :  { %444 = vmatpush.msrb.mxu3 %v387_v20 }
 0x2c7   :  { %573 = vmatmul.msk.f32.vlgmr.msrb.gmra.mxu3 %vm405_vm15, %v398_v8 }
 0x2c8   :  { %461 = vmatpush.msra.mxu3 %v397_v24 }
 0x2ca   :  { %462 = vmatpush.msra.mxu3 %v394_v26 }
 0x2cc   :  { %463 = vmatpush.msra.mxu3 %v391_v29 }
 0x2ce   :  { %464 = vmatpush.msra.mxu3 %v388_v30 }
 0x2cf   :  { %574 = vmatmul.msk.f32.vlgmr.msra.gmra.mxu3 %vm405_vm15, %v398_v8 }
 0x342   :  { %v426_v31 = vpop.f32.mrf.mxu3 }
 0x343   :  { %v427_v34 = vadd.f32 %v426_v31, %v403_v25 }
 0x345   :  { %v575_v36 = vmul.f32 -1.442695, %v427_v34 }
 0x347   :  { %599 = vpow2.f32 %v575_v36 }
 0x34a   :  { %v446_v21 = vpop.f32.mrf.mxu3 }
 0x34b   :  { %v447_v0 = vadd.f32 %v446_v21, %v403_v25 }
 0x34d   :  { %v576_v37 = vmul.f32 -1.442695, %v447_v0  ;;  %v600_v38 = vpop.eup %599 }
 0x34e   :  { %v478_v40 = vadd.f32 1.0, %v600_v38 }
 0x34f   :  { %601 = vpow2.f32 %v576_v37 }
 0x350   :  { %603 = vrcp.f32 %v478_v40  ;;  %v492_v1 = vand.u32 2147483648, %v478_v40  ;;  %vm486_vm7 = vweird.f32 %v478_v40  ;;  %v490_v5 = vand.u32 2147483647, %v478_v40 }
 0x352   :  { %v466_v42 = vpop.f32.mrf.mxu3  ;;  %v493_v33 = vor.u32 1.1754944e-38, %v492_v1  ;;  %vm491_vm13 = vcmp.eq.f32.partialorder %v490_v5, 8.507059e+37 }
 0x353   :  { %v467_v44 = vadd.f32 %v466_v42, %v403_v25 }
 0x355   :  { %v577_v45 = vmul.f32 -1.442695, %v467_v44  ;;  %v602_v53 = vpop.eup %601 }
 0x356   :  { %v479_v11 = vadd.f32 1.0, %v602_v53  ;;  %v604_v46 = vpop.eup %603 }
 0x357   :  { %605 = vpow2.f32 %v577_v45  ;;  %v482_v47 = vmul.f32 %v604_v46, %v478_v40  ;;  %vm487_vm4 = vweird.f32 %v604_v46 }
 0x358   :  { %607 = vrcp.f32 %v479_v11  ;;  %v507_v55 = vand.u32 2147483648, %v479_v11  ;;  %vm501_vm2 = vweird.f32 %v479_v11  ;;  %v505_v59 = vand.u32 2147483647, %v479_v11  ;;  %vm844_vm9 = vmor %vm486_vm7, %vm487_vm4 }
 0x359   :  { %v483_v51 = vsub.f32 1.0, %v482_v47 }
 0x35a   :  { %v508_v62 = vor.u32 1.1754944e-38, %v507_v55  ;;  %vm506_vm5 = vcmp.eq.f32.partialorder %v505_v59, 8.507059e+37 }
 0x35b   :  { %v484_v57 = vmul.f32 %v604_v46, %v483_v51 }
 0x35d   :  { %v606_v41 = vpop.eup %605  ;;  %v485_v27 = vadd.f32 %v604_v46, %v484_v57 }
 0x35e   :  { %v480_v48 = vadd.f32 1.0, %v606_v41  ;;  %v608_v49 = vpop.eup %607 }
 0x35f   :  { %v497_v50 = vmul.f32 %v608_v49, %v479_v11  ;;  %vm502_vm1 = vweird.f32 %v608_v49  ;;  %v489_v7 = vsel %vm844_vm9, %v604_v46, %v485_v27 }
 0x360   :  { %609 = vrcp.f32 %v480_v48  ;;  %vm503_vm3 = vmor %vm501_vm2, %vm502_vm1  ;;  %v522_v32 = vand.u32 2147483648, %v480_v48  ;;  %v520_v4 = vand.u32 2147483647, %v480_v48  ;;  %vm516_vm8 = vweird.f32 %v480_v48 }
 0x361   :  { %v498_v54 = vsub.f32 1.0, %v497_v50  ;;  %v494_v10 = vsel %vm491_vm13, %v493_v33, %v489_v7 }
 0x362   :  { %v523_v8 = vor.u32 1.1754944e-38, %v522_v32  ;;  %vm521_vm11 = vcmp.eq.f32.partialorder %v520_v4, 8.507059e+37 }
 0x363   :  { %v499_v52 = vmul.f32 %v608_v49, %v498_v54 }
 0x365   :  { %v500_v58 = vadd.f32 %v608_v49, %v499_v52 }
 0x366   :  { %v610_v56 = vpop.eup %609 }
 0x367   :  { %v512_v60 = vmul.f32 %v610_v56, %v480_v48  ;;  %v504_v61 = vsel %vm503_vm3, %v608_v49, %v500_v58  ;;  %vm517_vm6 = vweird.f32 %v610_v56 }
 0x368   :  { %v509_v3 = vsel %vm506_vm5, %v508_v62, %v504_v61  ;;  %vm518_vm10 = vmor %vm516_vm8, %vm517_vm6 }
 0x369   :  { %v513_v63 = vsub.f32 1.0, %v512_v60  ;;  %v529_v9 = vrot.slane %v509_v3, 7 }
 0x36b   :  { %v514_v2 = vmul.f32 %v610_v56, %v513_v63  ;;  %v532_v12 = vsel %vm531_vm12, %v494_v10, %v529_v9 }
 0x36d   :  { %v515_v22 = vadd.f32 %v610_v56, %v514_v2 }
 0x36f   :  { %v519_v19 = vsel %vm518_vm10, %v610_v56, %v515_v22 }
 0x370   :  { %v524_v43 = vsel %vm521_vm11, %v523_v8, %v519_v19 }
 0x371   :  { %v530_v28 = vrot.slane %v524_v43, 6 }
 0x373   :  { %v533_v23 = vsel %vm66_vm0, %v532_v12, %v530_v28 }
 0x374   :  { %539 = vst.msk [vmem:[#allocation5] sm:$0x7] %vm537_vm14, %v533_v23 }
 0x375   :  { %550 = dma.vmem_to_hbm [thread:$0]  %s546_s14, 48, %s548_s17, [#allocation4]  }
 0x376   :  { %661 = dma.done.wait [#allocation4], 48  }
 0x377   :  { %662 = vsyncadd [#allocation4], 4294967248 }
 0x378   :  { %555 = vsyncpa [#allocation3], 1 }
 0x379   :  { %556 = vsyncpa [#allocation4], 1 }

</bundles_post_ra>
